<compile_context>
chip_gen: v6e
topology: v6e:2x2x1
jax: 0.10.0
libtpu: 0.0.40
codegen_flags: <defaults>
</compile_context>

<pallas_src>
import functools

import jax
import jax.numpy as jnp
from jax.experimental import pallas as pl
from jax.experimental.pallas import tpu as pltpu


def _round_up(x: int, m: int) -> int:
    return (x + m - 1) // m * m


def _expert_fused_kernel(x_ref, w_ref, b_ref, o_ref, act_ref):
    """Grid = (row_tiles, layers). act_ref carries the activation across layers.

    Per layer:  act = sigmoid(act @ W_l + b_l) + act
    The output tile is written only on the last layer (single lane-dense store).
    """
    l = pl.program_id(1)

    @pl.when(l == 0)
    def _():
        act_ref[...] = x_ref[...].astype(jnp.float32)

    x = act_ref[...]                                      # (tm, Hp) f32
    w = w_ref[0]                                          # (Hp, Hp) compute dtype
    y = jnp.dot(x.astype(w.dtype), w,
                preferred_element_type=jnp.float32)       # MXU, f32 accumulation
    y = y + b_ref[0].astype(jnp.float32)                  # (1, Hp) broadcast
    act_ref[...] = jax.nn.sigmoid(y) + x                  # f32 VPU/EUP math

    @pl.when(l == pl.num_programs(1) - 1)
    def _():
        o_ref[...] = act_ref[...].astype(o_ref.dtype)


@functools.partial(jax.jit, static_argnames=("tm", "compute_dtype"))
def expert_forward(x, w, b, *, tm=256, compute_dtype=jnp.bfloat16):
    """Full Expert.forward in one fused kernel.

    x: (M, H) f32 tokens routed to this expert.
    w: (L, H, H) f32 weights, already transposed vs torch (y = x @ w[l] + b[l]).
    b: (L, 1, H) f32 biases.
    compute_dtype: dtype of the MXU operands (bf16 halves weight bandwidth and
        VMEM residency; sigmoid + residual stay f32). Use jnp.float32 for
        bit-accurate nn.Linear semantics.
    """
    M, H = x.shape
    L = w.shape[0]

    # Lane-dense hidden dim (multiple of 128) and row tile (multiple of 8).
    Hp = _round_up(H, 128)
    tm_eff = _round_up(min(tm, _round_up(M, 8)), 8)
    Mp = _round_up(M, tm_eff)

    # Zero padding keeps padded lanes inert: padded weight ROWS are zero, so
    # whatever accumulates in padded activation lanes (sigmoid(0)=0.5 per
    # layer) never leaks into valid lanes; padded rows/cols are sliced off.
    x_p = jnp.pad(x, ((0, Mp - M), (0, Hp - H)))
    w_p = jnp.pad(w, ((0, 0), (0, Hp - H), (0, Hp - H))).astype(compute_dtype)
    b_p = jnp.pad(b, ((0, 0), (0, 0), (0, Hp - H)))

    grid = (Mp // tm_eff, L)

    # Rough VMEM budget (double-buffered streams + f32 accumulator), clamped so
    # it stays within v7x's 64 MiB physical VMEM per core.
    w_bytes = jnp.dtype(compute_dtype).itemsize
    est = (4 * tm_eff * Hp * 4           # x in + out tiles, double-buffered, f32
           + 2 * Hp * Hp * w_bytes       # per-layer weight, double-buffered
           + 2 * Hp * 4                  # bias
           + tm_eff * Hp * 4)            # activation accumulator scratch
    vmem_limit = min(64 * 1024 * 1024, max(32 * 1024 * 1024, est + (4 << 20)))

    out_p = pl.pallas_call(
        _expert_fused_kernel,
        out_shape=jax.ShapeDtypeStruct((Mp, Hp), x.dtype),
        grid_spec=pltpu.PrefetchScalarGridSpec(
            num_scalar_prefetch=0,
            grid=grid,
            in_specs=[
                pl.BlockSpec((tm_eff, Hp), lambda i, l: (i, 0)),    # activations
                pl.BlockSpec((1, Hp, Hp), lambda i, l: (l, 0, 0)),  # layer weight
                pl.BlockSpec((1, 1, Hp), lambda i, l: (l, 0, 0)),   # layer bias
            ],
            out_specs=pl.BlockSpec((tm_eff, Hp), lambda i, l: (i, 0)),
            scratch_shapes=[pltpu.VMEM((tm_eff, Hp), jnp.float32)],
        ),
        compiler_params=pltpu.CompilerParams(
            dimension_semantics=("parallel", "arbitrary"),
            vmem_limit_bytes=vmem_limit,
        ),
        # Shape-preserving op: alias the (padded) activation input to the
        # output so no second (Mp, Hp) HBM buffer is allocated/written.
        input_output_aliases={0: 0},
    )(x_p, w_p, b_p)

    return out_p[:M, :H]


def init_expert_params(key, hidden_dim, n_layers):
    """Deterministic init mimicking torch.nn.Linear (uniform +-1/sqrt(fan_in)).

    Returns stacked weights (L, H, H) (transposed vs torch) and biases (L, 1, H).
    """
    bound = 1.0 / (hidden_dim ** 0.5)
    ws, bs = [], []
    for _ in range(n_layers):
        kw, kb, key = jax.random.split(key, 3)
        ws.append(jax.random.uniform(kw, (hidden_dim, hidden_dim),
                                     jnp.float32, -bound, bound))
        bs.append(jax.random.uniform(kb, (1, hidden_dim), jnp.float32,
                                     -bound, bound))
    return jnp.stack(ws), jnp.stack(bs)


def expert_forward_ref(x, w, b):
    """Pure-JAX f32 reference for correctness checking."""
    for l in range(w.shape[0]):
        x = jax.nn.sigmoid(x @ w[l] + b[l]) + x
    return x


if __name__ == "__main__":
    hidden_dim = 64
    n_layers = 2
    batch = 8          # tokens routed to this expert (ragged M is padded inside)

    key = jax.random.PRNGKey(0)
    kx, kp = jax.random.split(key)
    x = jax.random.normal(kx, (batch, hidden_dim), jnp.float32)
    w, b = init_expert_params(kp, hidden_dim, n_layers)

    ref = expert_forward_ref(x, w, b)

    # Exact-semantics path (f32 MXU operands): tight tolerance.
    out_f32 = jax.block_until_ready(
        expert_forward(x, w, b, compute_dtype=jnp.float32))
    assert out_f32.shape == (batch, hidden_dim)
    assert jnp.allclose(out_f32, ref, atol=1e-5, rtol=1e-5), "f32 mismatch"

    # Performance path (bf16 MXU operands, f32 accumulate + sigmoid/residual).
    out_bf16 = jax.block_until_ready(expert_forward(x, w, b))
    assert out_bf16.shape == (batch, hidden_dim)
    assert jnp.allclose(out_bf16, ref, atol=2e-2, rtol=2e-2), "bf16 mismatch"

    print("KERNEL_OK")
</pallas_src>

<mosaic_0001>
module attributes {stable_mosaic.version = 11 : i64} {
  func.func @_expert_fused_kernel(%arg0: i32, %arg1: i32, %arg2: memref<8x128xf32, #tpu.memory_space<vmem>>, %arg3: memref<1x128x128xf32, #tpu.memory_space<vmem>>, %arg4: memref<1x1x128xf32, #tpu.memory_space<vmem>>, %arg5: memref<8x128xf32, #tpu.memory_space<vmem>>, %arg6: memref<8x128xf32, #tpu.memory_space<vmem>>) attributes {dimension_semantics = [#tpu.dimension_semantics<parallel>, #tpu.dimension_semantics<arbitrary>], iteration_bounds = array<i64: 1, 2>, scalar_prefetch = 0 : i64, scratch_operands = 1 : i64, tpu.core_type = #tpu.core_type<tc>, window_params = [{transform_indices = @transform_0, window_bounds = array<i64: 8, 128>}, {transform_indices = @transform_1, window_bounds = array<i64: 1, 128, 128>}, {transform_indices = @transform_2, window_bounds = array<i64: 1, 1, 128>}, {transform_indices = @transform_3, window_bounds = array<i64: 8, 128>}]} {
    %c0_i32 = arith.constant 0 : i32
    %0 = arith.cmpi eq, %arg1, %c0_i32 : i32
    %1 = arith.extui %0 : i1 to i32
    %c0_i32_0 = arith.constant 0 : i32
    %2 = arith.cmpi ne, %1, %c0_i32_0 : i32
    scf.if %2 {
      %c0_12 = arith.constant 0 : index
      %c0_13 = arith.constant 0 : index
      %21 = vector.load %arg2[%c0_12, %c0_13] : memref<8x128xf32, #tpu.memory_space<vmem>>, vector<8x128xf32>
      %c0_14 = arith.constant 0 : index
      %c0_15 = arith.constant 0 : index
      %22 = vector.load %arg6[%c0_14, %c0_15] : memref<8x128xf32, #tpu.memory_space<vmem>>, vector<8x128xf32>
      tpu.vector_store %arg6[%c0_14, %c0_15], %21 {strides = array<i32>} : memref<8x128xf32, #tpu.memory_space<vmem>>, vector<8x128xf32>,
    } else {
    }
    %c0 = arith.constant 0 : index
    %c0_1 = arith.constant 0 : index
    %3 = vector.load %arg6[%c0, %c0_1] : memref<8x128xf32, #tpu.memory_space<vmem>>, vector<8x128xf32>
    %c0_2 = arith.constant 0 : index
    %c0_3 = arith.constant 0 : index
    %c0_4 = arith.constant 0 : index
    %4 = vector.load %arg3[%c0_2, %c0_3, %c0_4] : memref<1x128x128xf32, #tpu.memory_space<vmem>>, vector<1x128x128xf32>
    %5 = vector.shape_cast %4 : vector<1x128x128xf32> to vector<128x128xf32>
    %cst = arith.constant dense<0.000000e+00> : vector<8x128xf32>
    %6 = tpu.matmul %3, %5, %cst {dimension_numbers = #tpu.dot_dimension_numbers<[1], [0], [0], [1], [0, 0, 1, 1], [], []>} : vector<8x128xf32>, vector<128x128xf32>, vector<8x128xf32> -> vector<8x128xf32>
    %c0_5 = arith.constant 0 : index
    %c0_6 = arith.constant 0 : index
    %c0_7 = arith.constant 0 : index
    %7 = vector.load %arg4[%c0_5, %c0_6, %c0_7] : memref<1x1x128xf32, #tpu.memory_space<vmem>>, vector<1x1x128xf32>
    %8 = vector.shape_cast %7 : vector<1x1x128xf32> to vector<1x128xf32>
    %9 = vector.broadcast %8 : vector<1x128xf32> to vector<8x128xf32>
    %10 = arith.addf %6, %9 : vector<8x128xf32>
    %11 = arith.negf %10 : vector<8x128xf32>
    %12 = math.exp %11 : vector<8x128xf32>
    %cst_8 = arith.constant 1.000000e+00 : f32
    %13 = vector.broadcast %cst_8 : f32 to vector<8x128xf32>
    %14 = arith.addf %13, %12 : vector<8x128xf32>
    %15 = arith.divf %13, %14 : vector<8x128xf32>
    %16 = arith.addf %15, %3 : vector<8x128xf32>
    %c0_9 = arith.constant 0 : index
    %c0_10 = arith.constant 0 : index
    %17 = vector.load %arg6[%c0_9, %c0_10] : memref<8x128xf32, #tpu.memory_space<vmem>>, vector<8x128xf32>
    tpu.vector_store %arg6[%c0_9, %c0_10], %16 {strides = array<i32>} : memref<8x128xf32, #tpu.memory_space<vmem>>, vector<8x128xf32>,
    %c1_i32 = arith.constant 1 : i32
    %18 = arith.cmpi eq, %arg1, %c1_i32 : i32
    %19 = arith.extui %18 : i1 to i32
    %c0_i32_11 = arith.constant 0 : i32
    %20 = arith.cmpi ne, %19, %c0_i32_11 : i32
    scf.if %20 {
      %c0_12 = arith.constant 0 : index
      %c0_13 = arith.constant 0 : index
      %21 = vector.load %arg6[%c0_12, %c0_13] : memref<8x128xf32, #tpu.memory_space<vmem>>, vector<8x128xf32>
      %c0_14 = arith.constant 0 : index
      %c0_15 = arith.constant 0 : index
      %22 = vector.load %arg5[%c0_14, %c0_15] : memref<8x128xf32, #tpu.memory_space<vmem>>, vector<8x128xf32>
      tpu.vector_store %arg5[%c0_14, %c0_15], %21 {strides = array<i32>} : memref<8x128xf32, #tpu.memory_space<vmem>>, vector<8x128xf32>,
    } else {
    }
    return
  }
  func.func @transform_0(%arg0: i32, %arg1: i32) -> (i32, i32) {
    %c0_i32 = arith.constant 0 : i32
    %c0_i32_0 = arith.constant 0 : i32
    return %arg0, %c0_i32 : i32, i32
  }
  func.func @transform_1(%arg0: i32, %arg1: i32) -> (i32, i32, i32) {
    %c0_i32 = arith.constant 0 : i32
    %c0_i32_0 = arith.constant 0 : i32
    %c0_i32_1 = arith.constant 0 : i32
    return %arg1, %c0_i32, %c0_i32_0 : i32, i32, i32
  }
  func.func @transform_2(%arg0: i32, %arg1: i32) -> (i32, i32, i32) {
    %c0_i32 = arith.constant 0 : i32
    %c0_i32_0 = arith.constant 0 : i32
    %c0_i32_1 = arith.constant 0 : i32
    return %arg1, %c0_i32, %c0_i32_0 : i32, i32, i32
  }
  func.func @transform_3(%arg0: i32, %arg1: i32) -> (i32, i32) {
    %c0_i32 = arith.constant 0 : i32
    %c0_i32_0 = arith.constant 0 : i32
    return %arg0, %c0_i32 : i32, i32
  }
}

</mosaic_0001>

<bundles_post_ra>
// kernel: expert_forward.1
= control target key start
LH: loop header
LB: loop body
LE: loop exit
PB: predicated region body
PF: predicated region fallthrough
CT: control target
= control target key end

     0   :  { %s552_s12 = smov 0   ;;  %s554_s13 = smov 0   ;;  %s624_s0 = inlined_call_operand.vmem [shape: f32[8,128], index: 0, kind: input, shape index: {}, may-alias: {0,3}]   ;;  %s625_s1 = inlined_call_operand.vmem [shape: f32[2,128,128], index: 1, kind: input, shape index: {}]   ;;  %s626_s2 = inlined_call_operand.vmem [shape: f32[2,1,128], index: 2, kind: input, shape index: {}]   ;;  %s627_s3 = inlined_call_operand.vmem [shape: f32[8,128], index: 3, kind: output, shape index: {}, may-alias: {0,3}]  }
   0x1   :  { %s556_s14 = smov 0  }
   0x2 LB: > { %s22_s15 = sadd.s32 1, %s524_s13  ;;  %p413_p0 = scmp.ge.s32.totalorder %s528_s14, 1  ;;  %s528_s14 = sphi %s556_s14, %s13_s14   ;;  %s524_s13 = sphi %s554_s13, %s629_s13   ;;  %s520_s12 = sphi %s552_s12, %s628_s12  }
   0x3   : > { %p23_p1 = scmp.ge.s32.totalorder %s22_s15, 2  ;;  %p166_p2 = scmp.lt.s32.totalorder %s528_s14, 3 }
   0x5   : > { %s631_s15 = smov (%p23_p1, %s22_s15), 0  ;;  %p167_p3 = pnand %p413_p0, %p166_p2 }
   0x6   : > { %p200_p4 = scmp.lt.s32.totalorder (!%p167_p3), %s520_s12, 1  ;;  %p416_p5 = scmp.ne.s32.totalorder (!%p167_p3), %s520_s12, 0 }
   0x7   : > { %170 = sbr.rel (%p167_p3) target bundleno = 291 (0x123), region = 32 }
   0xc   : > { %s574_s16 = scalar_select %p200_p4, %s520_s12, 1 }
   0xd   : > { %215 = sbr.rel (%p416_p5) target bundleno = 20 (0x14), region = 36 }
   0xe   : > { %s423_s17 = sshll.u32 %s574_s16, 7  ;;  %s207_s20 = scalar_lea.vmem %s626_s2, %s574_s16 }
   0xf   : > { %s584_s23 = scalar_lea.vmem %s625_s1, %s423_s17 }
  0x12   : > { %v216_v0 = vld [vmem:[%s624_s0] sm:$0xff] }
  0x13   : > { %217 = vst [vmem:[#allocation2] sm:$0xff] %v216_v0 }
  0x14 PF: > { %v234_v1 = vld [vmem:[%s584_s23 + $0x78] sm:$0xff]  ;;  %v530_v2 = vmov 0.0   ;;  %v233_v3 = vld [vmem:[%s584_s23 + $0x70] sm:$0xff]  ;;  %vm531_vm0 = vmmov 0   ;;  %v232_v4 = vld [vmem:[%s584_s23 + $0x68] sm:$0xff]  ;;  %p419_p6 = scmp.ne.s32.totalorder %s520_s12, 1 }
  0x15   : > { %441 = vmatprep.subr.mxu0 %v530_v2  ;;  %473 = vmatprep.mubr.msk.f32.mxu0 %vm531_vm0, %v530_v2  ;;  %v231_v5 = vld [vmem:[%s584_s23 + $0x60] sm:$0xff]  ;;  %v230_v6 = vld [vmem:[%s584_s23 + $0x58] sm:$0xff]  ;;  %v229_v7 = vld [vmem:[%s584_s23 + $0x50] sm:$0xff] }
  0x16   : > { %442 = vmatpush3.msra.mxu0 %v234_v1  ;;  %v228_v8 = vld [vmem:[%s584_s23 + $0x48] sm:$0xff]  ;;  %v227_v9 = vld [vmem:[%s584_s23 + $0x40] sm:$0xff]  ;;  %v226_v10 = vld [vmem:[%s584_s23 + $0x38] sm:$0xff] }
  0x17   : > { %443 = vmatprep.subr.mxu0 %v530_v2  ;;  %v225_v11 = vld [vmem:[%s584_s23 + $0x30] sm:$0xff]  ;;  %v224_v12 = vld [vmem:[%s584_s23 + $0x28] sm:$0xff]  ;;  %v223_v13 = vld [vmem:[%s584_s23 + $0x20] sm:$0xff] }
  0x18   : > { %444 = vmatpush3.msra.mxu0 %v233_v3  ;;  %v222_v14 = vld [vmem:[%s584_s23 + $0x18] sm:$0xff]  ;;  %v221_v15 = vld [vmem:[%s584_s23 + $0x10] sm:$0xff]  ;;  %v220_v16 = vld [vmem:[%s584_s23 + $0x8] sm:$0xff] }
  0x19   : > { %445 = vmatprep.subr.mxu0 %v530_v2  ;;  %v219_v17 = vld [vmem:[%s584_s23] sm:$0xff] }
  0x1a   : > { %446 = vmatpush3.msra.mxu0 %v232_v4  ;;  %v218_v18 = vld [vmem:[#allocation2] sm:$0xff] }
  0x1b   : > { %447 = vmatprep.subr.mxu0 %v530_v2  ;;  %v417_v19 = vld [vmem:[%s207_s20] ss:$0 sm:$0xff] }
  0x1c   : > { %448 = vmatpush3.msra.mxu0 %v231_v5 }
  0x1d   : > { %449 = vmatprep.subr.mxu0 %v530_v2 }
  0x1e   : > { %450 = vmatpush3.msra.mxu0 %v230_v6 }
  0x1f   : > { %451 = vmatprep.subr.mxu0 %v530_v2 }
  0x20   : > { %452 = vmatpush3.msra.mxu0 %v229_v7 }
  0x21   : > { %453 = vmatprep.subr.mxu0 %v530_v2 }
  0x22   : > { %454 = vmatpush3.msra.mxu0 %v228_v8 }
  0x23   : > { %455 = vmatprep.subr.mxu0 %v530_v2 }
  0x24   : > { %456 = vmatpush3.msra.mxu0 %v227_v9 }
  0x25   : > { %457 = vmatprep.subr.mxu0 %v530_v2 }
  0x26   : > { %458 = vmatpush3.msra.mxu0 %v226_v10 }
  0x27   : > { %459 = vmatprep.subr.mxu0 %v530_v2 }
  0x28   : > { %460 = vmatpush3.msra.mxu0 %v225_v11 }
  0x29   : > { %461 = vmatprep.subr.mxu0 %v530_v2 }
  0x2a   : > { %462 = vmatpush3.msra.mxu0 %v224_v12 }
  0x2b   : > { %463 = vmatprep.subr.mxu0 %v530_v2 }
  0x2c   : > { %464 = vmatpush3.msra.mxu0 %v223_v13 }
  0x2d   : > { %465 = vmatprep.subr.mxu0 %v530_v2 }
  0x2e   : > { %466 = vmatpush3.msra.mxu0 %v222_v14 }
  0x2f   : > { %467 = vmatprep.subr.mxu0 %v530_v2 }
  0x30   : > { %468 = vmatpush3.msra.mxu0 %v221_v15 }
  0x31   : > { %469 = vmatprep.subr.mxu0 %v530_v2 }
  0x32   : > { %470 = vmatpush3.msra.mxu0 %v220_v16 }
  0x33   : > { %471 = vmatprep.subr.mxu0 %v530_v2 }
  0x34   : > { %472 = vmatpush3.msra.mxu0 %v219_v17 }
  0x35   : > { %474 = vmatmul.mubr.f32.vlgmr.msra.gmra.mxu0 %v218_v18 }
  0xf5   : > { %v308_v20 = vpop.f32.mrf.mxu0 }
  0xf6   : > { %v309_v21 = vadd.f32 %v417_v19, %v308_v20 }
  0xf7   : > { %v475_v22 = vpop.f32.mrf.mxu0 }
  0xf8   : > { %v418_v23 = vmul.f32 -1.442695, %v309_v21 }
  0xfa   : > { %502 = vpow2.f32 %v418_v23 }
 0x107   : > { %v503_v24 = vpop.eup %502 }
 0x108   : > { %v315_v25 = vadd.f32 1.0, %v503_v24 }
 0x10a   : > { %504 = vrcp.f32 %v315_v25 }
 0x116   : > { %323 = sbr.rel (%p419_p6) target bundleno = 291 (0x123), region = 40 }
 0x117   : > { %v505_v26 = vpop.eup %504 }
 0x118   : > { %v318_v27 = vadd.f32 %v505_v26, %v218_v18 }
 0x11a   : > { %319 = vst [vmem:[#allocation2] sm:$0xff] %v318_v27 }
 0x121   : > { %v324_v28 = vld [vmem:[#allocation2] sm:$0xff] }
 0x122   : > { %325 = vst [vmem:[%s627_s3] sm:$0xff] %v324_v28 }
 0x123 PF: > { %s13_s14 = sadd.s32 1, %s528_s14   ;;  %s628_s12 = smov %s524_s13 }
 0x124   : > { %p10_p7 = scmp.ge.s32.totalorder %s13_s14, 4   ;;  %s629_s13 = smov %s631_s15 }
 0x126   :  { %12 = sbr.rel (!%p10_p7) target bundleno = 2 (0x2), region = 76 }

</bundles_post_ra>
